<compile_context>
chip_gen: v6e
topology: v6e:2x2x1
jax: 0.10.0
libtpu: 0.0.40
codegen_flags: <defaults>
</compile_context>

<pallas_src>
import functools

import jax
import jax.numpy as jnp
from jax.experimental import pallas as pl
from jax.experimental.pallas import tpu as pltpu

_BN_EPS = 1e-5


def _elu(x):
    # Clamp the exp() input so the untaken branch never produces inf; within
    # f32 this matches torch.nn.ELU to well below the test tolerance.
    return jnp.where(x > 0, x, jnp.exp(jnp.minimum(x, 0.0)) - 1.0)


def _fold_bn(gamma, beta, mean, var):
    scale = gamma / jnp.sqrt(var + _BN_EPS)
    shift = beta - mean * scale
    return scale[None, :], shift[None, :]


# --------------------------------------------------------------------------
# Fused kernel: expand 1x1 -> BN -> ELU -> depthwise 3x3 -> BN -> ELU ->
#               project 1x1 -> BN (+ residual).  One image per grid step.
# All tensors are lane-packed: channels fastest on the lane axis, W next.
# --------------------------------------------------------------------------
def _fused_inverted_residual_kernel(*refs, H, W, Ho, Wo, hid, stride, ksize,
                                    expand, shortcut):
    if expand:
        (x_ref, we_ref, b1_ref, wd_ref, b2_ref, wp_ref, b3_ref,
         o_ref, hpad_ref) = refs
    else:
        (x_ref, wd_ref, b2_ref, wp_ref, b3_ref, o_ref, hpad_ref) = refs
        we_ref = b1_ref = None

    pad = (ksize - 1) // 2
    Hpad, Lpad = hpad_ref.shape              # (H + 2p, (W + 2p) * hid)

    # Packed input slab: (H, W*Cin).
    x = x_ref[...].reshape(x_ref.shape[1:])

    # ---- Stage 1: 1x1 expand conv (block-diag weights, BN1 folded) + ELU ---
    if expand:
        h = jnp.dot(x, we_ref[...], preferred_element_type=jnp.float32)
        h = _elu(h + b1_ref[...])            # (H, W*hid), still lane-packed
    else:
        h = x.astype(jnp.float32)            # hid == Cin: packed layouts match

    # ---- Hidden activation -> zero-padded VMEM scratch ---------------------
    # Only the halo is zeroed (tiny); the interior is fully overwritten every
    # step, so no stale data can leak between images.
    if pad:
        zrow = jnp.zeros((pad, Lpad), jnp.float32)
        zcol = jnp.zeros((H, pad * hid), jnp.float32)
        hpad_ref[:pad, :] = zrow
        hpad_ref[pad + H:, :] = zrow
        hpad_ref[pad:pad + H, :pad * hid] = zcol
        hpad_ref[pad:pad + H, (pad + W) * hid:] = zcol
    hpad_ref[pad:pad + H, pad * hid:(pad + W) * hid] = h
    xp = hpad_ref[...]                       # (Hpad, Lpad), f32, packed

    # ---- Stage 2: 3x3 depthwise conv (BN2 scale folded) + shift + ELU ------
    wd = wd_ref[...]                         # (k, k, Wo*hid), W-tiled weights
    acc = None
    if stride == 1:
        for dx in range(ksize):
            for dy in range(ksize):
                # Static (dy, dx*hid) offsets -> cheap sublane/lane shifts
                # (XLU) of the packed buffer; no 3-D relayout.
                patch = jax.lax.slice(xp, (dy, dx * hid),
                                      (dy + Ho, dx * hid + Wo * hid))
                term = patch * wd[dy, dx]
                acc = term if acc is None else acc + term
    else:
        # TODO(synk): generic strided path (never traced by the tests below);
        # functional but unoptimized — replace the strided 3-D slices with a
        # contiguous slice + lane downsample when stride>1 is exercised.
        Wpadc = Lpad // hid
        xp3 = xp.reshape(Hpad, Wpadc, hid)
        acc3 = None
        for dy in range(ksize):
            for dx in range(ksize):
                patch = jax.lax.slice(
                    xp3, (dy, dx, 0),
                    (dy + (Ho - 1) * stride + 1,
                     dx + (Wo - 1) * stride + 1, hid),
                    (stride, stride, 1))
                term = patch * wd[dy, dx, :hid]
                acc3 = term if acc3 is None else acc3 + term
        acc = acc3.reshape(Ho, Wo * hid)
    d = _elu(acc + b2_ref[...])              # (Ho, Wo*hid)

    # ---- Stage 3: 1x1 project conv (block-diag, BN3 folded) (+ residual) ---
    y = jnp.dot(d, wp_ref[...], preferred_element_type=jnp.float32)
    y = y + b3_ref[...]                      # (Ho, Wo*Cout)
    if shortcut:
        y = y + x.astype(jnp.float32)        # identical packing: Wo*Cout==W*Cin
    o_ref[...] = y.reshape(o_ref.shape).astype(o_ref.dtype)


# --------------------------------------------------------------------------
# Public forward: accepts/returns NCHW like the PyTorch module.
# --------------------------------------------------------------------------
def inverted_residual_forward(x_nchw, params, *, stride, expand_ratio):
    N, Cin, H, W = x_nchw.shape
    hidden = params["w_dw"].shape[0]
    Cout = params["w_proj"].shape[0]
    ksize = params["w_dw"].shape[-1]
    pad = (ksize - 1) // 2
    Ho = (H + 2 * pad - ksize) // stride + 1
    Wo = (W + 2 * pad - ksize) // stride + 1
    use_shortcut = (stride == 1) and (Cin == Cout)
    expand = expand_ratio != 1

    # NCHW -> NHWC -> lane-packed (N, H, W*Cin): channels fastest on lanes.
    x_packed = jnp.transpose(x_nchw, (0, 2, 3, 1)).reshape(N, H, W * Cin)

    # Fold BN scales into conv weights and build lane-packed / block-diagonal
    # forms (one-time prep, constant-folded by XLA).
    s2, b2 = _fold_bn(*params["bn2"])
    wd = jnp.transpose(params["w_dw"][:, 0], (1, 2, 0)) * s2[0]      # (k,k,hid)
    wd_p = jnp.tile(wd, (1, 1, Wo))                                  # (k,k,Wo*hid)
    b2_p = jnp.tile(b2, (1, Wo))                                     # (1, Wo*hid)

    s3, b3 = _fold_bn(*params["bn3"])
    wp = jnp.transpose(params["w_proj"][:, :, 0, 0]) * s3            # (hid, Cout)
    wp_big = jnp.kron(jnp.eye(Wo, dtype=wp.dtype), wp)               # (Wo*hid, Wo*Cout)
    b3_p = jnp.tile(b3, (1, Wo))                                     # (1, Wo*Cout)

    args = [x_packed]
    in_specs = [pl.BlockSpec((1, H, W * Cin), lambda n: (n, 0, 0))]
    if expand:
        s1, b1 = _fold_bn(*params["bn1"])
        we = jnp.transpose(params["w_expand"][:, :, 0, 0]) * s1      # (Cin, hid)
        we_big = jnp.kron(jnp.eye(W, dtype=we.dtype), we)            # (W*Cin, W*hid)
        b1_p = jnp.tile(b1, (1, W))                                  # (1, W*hid)
        args += [we_big, b1_p]
        in_specs += [pl.BlockSpec((W * Cin, W * hidden), lambda n: (0, 0)),
                     pl.BlockSpec((1, W * hidden), lambda n: (0, 0))]
    args += [wd_p, b2_p, wp_big, b3_p]
    in_specs += [pl.BlockSpec((ksize, ksize, Wo * hidden), lambda n: (0, 0, 0)),
                 pl.BlockSpec((1, Wo * hidden), lambda n: (0, 0)),
                 pl.BlockSpec((Wo * hidden, Wo * Cout), lambda n: (0, 0)),
                 pl.BlockSpec((1, Wo * Cout), lambda n: (0, 0))]

    kernel = functools.partial(_fused_inverted_residual_kernel,
                               H=H, W=W, Ho=Ho, Wo=Wo, hid=hidden,
                               stride=stride, ksize=ksize,
                               expand=expand, shortcut=use_shortcut)

    # One image per grid step, "parallel" so multi-TensorCore parts (v7x)
    # split the batch across cores.  vmem_limit is generous for these tiny
    # blocks; re-derive per generation (64 MiB on v7x) for real image sizes.
    out_packed = pl.pallas_call(
        kernel,
        out_shape=jax.ShapeDtypeStruct((N, Ho, Wo * Cout), x_packed.dtype),
        grid_spec=pltpu.PrefetchScalarGridSpec(
            num_scalar_prefetch=0,
            grid=(N,),
            in_specs=in_specs,
            out_specs=pl.BlockSpec((1, Ho, Wo * Cout), lambda n: (n, 0, 0)),
            scratch_shapes=[
                pltpu.VMEM((H + 2 * pad, (W + 2 * pad) * hidden), jnp.float32)],
        ),
        compiler_params=pltpu.CompilerParams(
            dimension_semantics=("parallel",),
            vmem_limit_bytes=32 * 1024 * 1024),
    )(*args)

    out_nhwc = out_packed.reshape(N, Ho, Wo, Cout)
    return jnp.transpose(out_nhwc, (0, 3, 1, 2))                     # -> NCHW


# --------------------------------------------------------------------------
# Parameter init (deterministic) + pure-JAX reference for validation
# --------------------------------------------------------------------------
def init_params(key, in_ch, out_ch, expand_ratio):
    hidden = in_ch * expand_ratio
    ks = jax.random.split(key, 15)

    def bn(k0, k1, k2, k3, c):
        gamma = jax.random.uniform(k0, (c,), jnp.float32, 0.5, 1.5)
        beta = 0.1 * jax.random.normal(k1, (c,), jnp.float32)
        mean = 0.1 * jax.random.normal(k2, (c,), jnp.float32)
        var = jax.random.uniform(k3, (c,), jnp.float32, 0.5, 1.5)
        return gamma, beta, mean, var

    p = {}
    p["w_expand"] = 0.1 * jax.random.normal(ks[0], (hidden, in_ch, 1, 1),
                                            jnp.float32)
    p["bn1"] = bn(ks[1], ks[2], ks[3], ks[4], hidden)
    p["w_dw"] = 0.1 * jax.random.normal(ks[5], (hidden, 1, 3, 3), jnp.float32)
    p["bn2"] = bn(ks[6], ks[7], ks[8], ks[9], hidden)
    p["w_proj"] = 0.1 * jax.random.normal(ks[10], (out_ch, hidden, 1, 1),
                                          jnp.float32)
    p["bn3"] = bn(ks[11], ks[12], ks[13], ks[14], out_ch)
    return p


def reference_forward(x, params, *, stride, expand_ratio):
    def bn_apply(y, bnp):
        gamma, beta, mean, var = bnp
        sc = (gamma / jnp.sqrt(var + _BN_EPS))[None, :, None, None]
        sh = (beta - mean * gamma / jnp.sqrt(var + _BN_EPS))[None, :, None, None]
        return y * sc + sh

    dn = ("NCHW", "OIHW", "NCHW")
    Cin = x.shape[1]
    hidden = params["w_dw"].shape[0]
    Cout = params["w_proj"].shape[0]
    use_shortcut = (stride == 1) and (Cin == Cout)

    h = x
    if expand_ratio != 1:
        h = jax.lax.conv_general_dilated(h, params["w_expand"], (1, 1),
                                         [(0, 0), (0, 0)],
                                         dimension_numbers=dn)
        h = _elu(bn_apply(h, params["bn1"]))
    h = jax.lax.conv_general_dilated(h, params["w_dw"], (stride, stride),
                                     [(1, 1), (1, 1)], dimension_numbers=dn,
                                     feature_group_count=hidden)
    h = _elu(bn_apply(h, params["bn2"]))
    h = jax.lax.conv_general_dilated(h, params["w_proj"], (1, 1),
                                     [(0, 0), (0, 0)], dimension_numbers=dn)
    h = bn_apply(h, params["bn3"])
    return x + h if use_shortcut else h


if __name__ == "__main__":
    key = jax.random.PRNGKey(0)
    configs = [
        # (N, Cin, Cout, H, W, stride, expand_ratio)
        (2, 4, 4, 16, 16, 1, 2),   # expand + residual shortcut (main config)
        (2, 8, 8, 16, 16, 1, 1),   # expand_ratio == 1 path (no 1x1 expand)
        (2, 4, 8, 16, 16, 1, 2),   # Cin != Cout -> no residual shortcut
    ]
    for idx, (N, Cin, Cout, H, W, stride, er) in enumerate(configs):
        kx, kp, key = jax.random.split(key, 3)
        x = jax.random.normal(kx, (N, Cin, H, W), jnp.float32)
        params = init_params(kp, Cin, Cout, er)

        out = inverted_residual_forward(x, params, stride=stride,
                                        expand_ratio=er)
        out = jax.block_until_ready(out)

        ref = reference_forward(x, params, stride=stride, expand_ratio=er)
        assert out.shape == ref.shape, (idx, out.shape, ref.shape)
        assert jnp.allclose(out, ref, atol=1e-4, rtol=1e-4), \
            f"mismatch vs reference in config {idx}"

    print("KERNEL_OK")
</pallas_src>

<mosaic_0001>
module attributes {stable_mosaic.version = 11 : i64} {
  func.func @_fused_inverted_residual_kernel(%arg0: i32, %arg1: memref<1x16x64xf32, #tpu.memory_space<vmem>>, %arg2: memref<64x128xf32, #tpu.memory_space<vmem>>, %arg3: memref<1x128xf32, #tpu.memory_space<vmem>>, %arg4: memref<3x3x128xf32, #tpu.memory_space<vmem>>, %arg5: memref<1x128xf32, #tpu.memory_space<vmem>>, %arg6: memref<128x64xf32, #tpu.memory_space<vmem>>, %arg7: memref<1x64xf32, #tpu.memory_space<vmem>>, %arg8: memref<1x16x64xf32, #tpu.memory_space<vmem>>, %arg9: memref<18x144xf32, #tpu.memory_space<vmem>>) attributes {dimension_semantics = [#tpu.dimension_semantics<parallel>], iteration_bounds = array<i64: 2>, scalar_prefetch = 0 : i64, scratch_operands = 1 : i64, tpu.core_type = #tpu.core_type<tc>, window_params = [{transform_indices = @transform_0, window_bounds = array<i64: 1, 16, 64>}, {pipeline_mode = #tpu.pipeline_mode<synchronous>, transform_indices = @transform_1, window_bounds = array<i64: 64, 128>}, {pipeline_mode = #tpu.pipeline_mode<synchronous>, transform_indices = @transform_2, window_bounds = array<i64: 1, 128>}, {pipeline_mode = #tpu.pipeline_mode<synchronous>, transform_indices = @transform_3, window_bounds = array<i64: 3, 3, 128>}, {pipeline_mode = #tpu.pipeline_mode<synchronous>, transform_indices = @transform_4, window_bounds = array<i64: 1, 128>}, {pipeline_mode = #tpu.pipeline_mode<synchronous>, transform_indices = @transform_5, window_bounds = array<i64: 128, 64>}, {pipeline_mode = #tpu.pipeline_mode<synchronous>, transform_indices = @transform_6, window_bounds = array<i64: 1, 64>}, {transform_indices = @transform_7, window_bounds = array<i64: 1, 16, 64>}]} {
    %c0 = arith.constant 0 : index
    %c0_0 = arith.constant 0 : index
    %c0_1 = arith.constant 0 : index
    %0 = vector.load %arg1[%c0, %c0_0, %c0_1] : memref<1x16x64xf32, #tpu.memory_space<vmem>>, vector<1x16x64xf32>
    %1 = vector.shape_cast %0 : vector<1x16x64xf32> to vector<16x64xf32>
    %c0_2 = arith.constant 0 : index
    %c0_3 = arith.constant 0 : index
    %2 = vector.load %arg2[%c0_2, %c0_3] : memref<64x128xf32, #tpu.memory_space<vmem>>, vector<64x128xf32>
    %cst = arith.constant dense<0.000000e+00> : vector<16x128xf32>
    %3 = tpu.matmul %1, %2, %cst {dimension_numbers = #tpu.dot_dimension_numbers<[1], [0], [0], [1], [0, 0, 1, 1], [], []>} : vector<16x64xf32>, vector<64x128xf32>, vector<16x128xf32> -> vector<16x128xf32>
    %c0_4 = arith.constant 0 : index
    %c0_5 = arith.constant 0 : index
    %4 = vector.load %arg3[%c0_4, %c0_5] : memref<1x128xf32, #tpu.memory_space<vmem>>, vector<1x128xf32>
    %5 = vector.broadcast %4 : vector<1x128xf32> to vector<16x128xf32>
    %6 = arith.addf %3, %5 : vector<16x128xf32>
    %cst_6 = arith.constant 0.000000e+00 : f32
    %7 = vector.broadcast %cst_6 : f32 to vector<16x128xf32>
    %8 = arith.cmpf ogt, %6, %7 : vector<16x128xf32>
    %cst_7 = arith.constant 0.000000e+00 : f32
    %9 = vector.broadcast %cst_7 : f32 to vector<16x128xf32>
    %10 = arith.minimumf %6, %9 : vector<16x128xf32>
    %11 = math.exp %10 : vector<16x128xf32>
    %cst_8 = arith.constant 1.000000e+00 : f32
    %12 = vector.broadcast %cst_8 : f32 to vector<16x128xf32>
    %13 = arith.subf %11, %12 : vector<16x128xf32>
    %14 = arith.select %8, %6, %13 : vector<16x128xi1>, vector<16x128xf32>
    %cst_9 = arith.constant 0.000000e+00 : f32
    %15 = vector.broadcast %cst_9 : f32 to vector<1x144xf32>
    %cst_10 = arith.constant 0.000000e+00 : f32
    %16 = vector.broadcast %cst_10 : f32 to vector<16x8xf32>
    %c0_11 = arith.constant 0 : index
    %c0_12 = arith.constant 0 : index
    %17 = vector.load %arg9[%c0_11, %c0_12] : memref<18x144xf32, #tpu.memory_space<vmem>>, vector<1x144xf32>
    tpu.vector_store %arg9[%c0_11, %c0_12], %15 {strides = array<i32>} : memref<18x144xf32, #tpu.memory_space<vmem>>, vector<1x144xf32>,
    %c17 = arith.constant 17 : index
    %c0_13 = arith.constant 0 : index
    %18 = vector.load %arg9[%c17, %c0_13] : memref<18x144xf32, #tpu.memory_space<vmem>>, vector<1x144xf32>
    tpu.vector_store %arg9[%c17, %c0_13], %15 {strides = array<i32>} : memref<18x144xf32, #tpu.memory_space<vmem>>, vector<1x144xf32>,
    %c1 = arith.constant 1 : index
    %c0_14 = arith.constant 0 : index
    %19 = vector.load %arg9[%c1, %c0_14] : memref<18x144xf32, #tpu.memory_space<vmem>>, vector<16x8xf32>
    tpu.vector_store %arg9[%c1, %c0_14], %16 {strides = array<i32>} : memref<18x144xf32, #tpu.memory_space<vmem>>, vector<16x8xf32>,
    %c1_15 = arith.constant 1 : index
    %c136 = arith.constant 136 : index
    %20 = vector.load %arg9[%c1_15, %c136] : memref<18x144xf32, #tpu.memory_space<vmem>>, vector<16x8xf32>
    tpu.vector_store %arg9[%c1_15, %c136], %16 {strides = array<i32>} : memref<18x144xf32, #tpu.memory_space<vmem>>, vector<16x8xf32>,
    %c1_16 = arith.constant 1 : index
    %c8 = arith.constant 8 : index
    %21 = vector.load %arg9[%c1_16, %c8] : memref<18x144xf32, #tpu.memory_space<vmem>>, vector<16x128xf32>
    tpu.vector_store %arg9[%c1_16, %c8], %14 {strides = array<i32>} : memref<18x144xf32, #tpu.memory_space<vmem>>, vector<16x128xf32>,
    %c0_17 = arith.constant 0 : index
    %c0_18 = arith.constant 0 : index
    %22 = vector.load %arg9[%c0_17, %c0_18] : memref<18x144xf32, #tpu.memory_space<vmem>>, vector<18x144xf32>
    %c0_19 = arith.constant 0 : index
    %c0_20 = arith.constant 0 : index
    %c0_21 = arith.constant 0 : index
    %23 = vector.load %arg4[%c0_19, %c0_20, %c0_21] : memref<3x3x128xf32, #tpu.memory_space<vmem>>, vector<3x3x128xf32>
    %24 = vector.extract_strided_slice %22 {offsets = [0, 0], sizes = [16, 128], strides = [1, 1]} : vector<18x144xf32> to vector<16x128xf32>
    %25 = vector.extract_strided_slice %23 {offsets = [0, 0, 0], sizes = [1, 1, 128], strides = [1, 1, 1]} : vector<3x3x128xf32> to vector<1x1x128xf32>
    %26 = vector.shape_cast %25 : vector<1x1x128xf32> to vector<128xf32>
    %27 = vector.shape_cast %26 : vector<128xf32> to vector<1x128xf32>
    %28 = vector.broadcast %27 : vector<1x128xf32> to vector<16x128xf32>
    %29 = arith.mulf %24, %28 : vector<16x128xf32>
    %30 = vector.extract_strided_slice %22 {offsets = [1, 0], sizes = [16, 128], strides = [1, 1]} : vector<18x144xf32> to vector<16x128xf32>
    %31 = vector.extract_strided_slice %23 {offsets = [1, 0, 0], sizes = [1, 1, 128], strides = [1, 1, 1]} : vector<3x3x128xf32> to vector<1x1x128xf32>
    %32 = vector.shape_cast %31 : vector<1x1x128xf32> to vector<128xf32>
    %33 = vector.shape_cast %32 : vector<128xf32> to vector<1x128xf32>
    %34 = vector.broadcast %33 : vector<1x128xf32> to vector<16x128xf32>
    %35 = arith.mulf %30, %34 : vector<16x128xf32>
    %36 = arith.addf %29, %35 : vector<16x128xf32>
    %37 = vector.extract_strided_slice %22 {offsets = [2, 0], sizes = [16, 128], strides = [1, 1]} : vector<18x144xf32> to vector<16x128xf32>
    %38 = vector.extract_strided_slice %23 {offsets = [2, 0, 0], sizes = [1, 1, 128], strides = [1, 1, 1]} : vector<3x3x128xf32> to vector<1x1x128xf32>
    %39 = vector.shape_cast %38 : vector<1x1x128xf32> to vector<128xf32>
    %40 = vector.shape_cast %39 : vector<128xf32> to vector<1x128xf32>
    %41 = vector.broadcast %40 : vector<1x128xf32> to vector<16x128xf32>
    %42 = arith.mulf %37, %41 : vector<16x128xf32>
    %43 = arith.addf %36, %42 : vector<16x128xf32>
    %44 = vector.extract_strided_slice %22 {offsets = [0, 8], sizes = [16, 128], strides = [1, 1]} : vector<18x144xf32> to vector<16x128xf32>
    %45 = vector.extract_strided_slice %23 {offsets = [0, 1, 0], sizes = [1, 1, 128], strides = [1, 1, 1]} : vector<3x3x128xf32> to vector<1x1x128xf32>
    %46 = vector.shape_cast %45 : vector<1x1x128xf32> to vector<128xf32>
    %47 = vector.shape_cast %46 : vector<128xf32> to vector<1x128xf32>
    %48 = vector.broadcast %47 : vector<1x128xf32> to vector<16x128xf32>
    %49 = arith.mulf %44, %48 : vector<16x128xf32>
    %50 = arith.addf %43, %49 : vector<16x128xf32>
    %51 = vector.extract_strided_slice %22 {offsets = [1, 8], sizes = [16, 128], strides = [1, 1]} : vector<18x144xf32> to vector<16x128xf32>
    %52 = vector.extract_strided_slice %23 {offsets = [1, 1, 0], sizes = [1, 1, 128], strides = [1, 1, 1]} : vector<3x3x128xf32> to vector<1x1x128xf32>
    %53 = vector.shape_cast %52 : vector<1x1x128xf32> to vector<128xf32>
    %54 = vector.shape_cast %53 : vector<128xf32> to vector<1x128xf32>
    %55 = vector.broadcast %54 : vector<1x128xf32> to vector<16x128xf32>
    %56 = arith.mulf %51, %55 : vector<16x128xf32>
    %57 = arith.addf %50, %56 : vector<16x128xf32>
    %58 = vector.extract_strided_slice %22 {offsets = [2, 8], sizes = [16, 128], strides = [1, 1]} : vector<18x144xf32> to vector<16x128xf32>
    %59 = vector.extract_strided_slice %23 {offsets = [2, 1, 0], sizes = [1, 1, 128], strides = [1, 1, 1]} : vector<3x3x128xf32> to vector<1x1x128xf32>
    %60 = vector.shape_cast %59 : vector<1x1x128xf32> to vector<128xf32>
    %61 = vector.shape_cast %60 : vector<128xf32> to vector<1x128xf32>
    %62 = vector.broadcast %61 : vector<1x128xf32> to vector<16x128xf32>
    %63 = arith.mulf %58, %62 : vector<16x128xf32>
    %64 = arith.addf %57, %63 : vector<16x128xf32>
    %65 = vector.extract_strided_slice %22 {offsets = [0, 16], sizes = [16, 128], strides = [1, 1]} : vector<18x144xf32> to vector<16x128xf32>
    %66 = vector.extract_strided_slice %23 {offsets = [0, 2, 0], sizes = [1, 1, 128], strides = [1, 1, 1]} : vector<3x3x128xf32> to vector<1x1x128xf32>
    %67 = vector.shape_cast %66 : vector<1x1x128xf32> to vector<128xf32>
    %68 = vector.shape_cast %67 : vector<128xf32> to vector<1x128xf32>
    %69 = vector.broadcast %68 : vector<1x128xf32> to vector<16x128xf32>
    %70 = arith.mulf %65, %69 : vector<16x128xf32>
    %71 = arith.addf %64, %70 : vector<16x128xf32>
    %72 = vector.extract_strided_slice %22 {offsets = [1, 16], sizes = [16, 128], strides = [1, 1]} : vector<18x144xf32> to vector<16x128xf32>
    %73 = vector.extract_strided_slice %23 {offsets = [1, 2, 0], sizes = [1, 1, 128], strides = [1, 1, 1]} : vector<3x3x128xf32> to vector<1x1x128xf32>
    %74 = vector.shape_cast %73 : vector<1x1x128xf32> to vector<128xf32>
    %75 = vector.shape_cast %74 : vector<128xf32> to vector<1x128xf32>
    %76 = vector.broadcast %75 : vector<1x128xf32> to vector<16x128xf32>
    %77 = arith.mulf %72, %76 : vector<16x128xf32>
    %78 = arith.addf %71, %77 : vector<16x128xf32>
    %79 = vector.extract_strided_slice %22 {offsets = [2, 16], sizes = [16, 128], strides = [1, 1]} : vector<18x144xf32> to vector<16x128xf32>
    %80 = vector.extract_strided_slice %23 {offsets = [2, 2, 0], sizes = [1, 1, 128], strides = [1, 1, 1]} : vector<3x3x128xf32> to vector<1x1x128xf32>
    %81 = vector.shape_cast %80 : vector<1x1x128xf32> to vector<128xf32>
    %82 = vector.shape_cast %81 : vector<128xf32> to vector<1x128xf32>
    %83 = vector.broadcast %82 : vector<1x128xf32> to vector<16x128xf32>
    %84 = arith.mulf %79, %83 : vector<16x128xf32>
    %85 = arith.addf %78, %84 : vector<16x128xf32>
    %c0_22 = arith.constant 0 : index
    %c0_23 = arith.constant 0 : index
    %86 = vector.load %arg5[%c0_22, %c0_23] : memref<1x128xf32, #tpu.memory_space<vmem>>, vector<1x128xf32>
    %87 = vector.broadcast %86 : vector<1x128xf32> to vector<16x128xf32>
    %88 = arith.addf %85, %87 : vector<16x128xf32>
    %cst_24 = arith.constant 0.000000e+00 : f32
    %89 = vector.broadcast %cst_24 : f32 to vector<16x128xf32>
    %90 = arith.cmpf ogt, %88, %89 : vector<16x128xf32>
    %cst_25 = arith.constant 0.000000e+00 : f32
    %91 = vector.broadcast %cst_25 : f32 to vector<16x128xf32>
    %92 = arith.minimumf %88, %91 : vector<16x128xf32>
    %93 = math.exp %92 : vector<16x128xf32>
    %cst_26 = arith.constant 1.000000e+00 : f32
    %94 = vector.broadcast %cst_26 : f32 to vector<16x128xf32>
    %95 = arith.subf %93, %94 : vector<16x128xf32>
    %96 = arith.select %90, %88, %95 : vector<16x128xi1>, vector<16x128xf32>
    %c0_27 = arith.constant 0 : index
    %c0_28 = arith.constant 0 : index
    %97 = vector.load %arg6[%c0_27, %c0_28] : memref<128x64xf32, #tpu.memory_space<vmem>>, vector<128x64xf32>
    %cst_29 = arith.constant dense<0.000000e+00> : vector<16x64xf32>
    %98 = tpu.matmul %96, %97, %cst_29 {dimension_numbers = #tpu.dot_dimension_numbers<[1], [0], [0], [1], [0, 0, 1, 1], [], []>} : vector<16x128xf32>, vector<128x64xf32>, vector<16x64xf32> -> vector<16x64xf32>
    %c0_30 = arith.constant 0 : index
    %c0_31 = arith.constant 0 : index
    %99 = vector.load %arg7[%c0_30, %c0_31] : memref<1x64xf32, #tpu.memory_space<vmem>>, vector<1x64xf32>
    %100 = vector.broadcast %99 : vector<1x64xf32> to vector<16x64xf32>
    %101 = arith.addf %98, %100 : vector<16x64xf32>
    %102 = arith.addf %101, %1 : vector<16x64xf32>
    %103 = vector.shape_cast %102 : vector<16x64xf32> to vector<1x16x64xf32>
    %c0_32 = arith.constant 0 : index
    %c0_33 = arith.constant 0 : index
    %c0_34 = arith.constant 0 : index
    %104 = vector.load %arg8[%c0_32, %c0_33, %c0_34] : memref<1x16x64xf32, #tpu.memory_space<vmem>>, vector<1x16x64xf32>
    tpu.vector_store %arg8[%c0_32, %c0_33, %c0_34], %103 {strides = array<i32>} : memref<1x16x64xf32, #tpu.memory_space<vmem>>, vector<1x16x64xf32>,
    return
  }
  func.func @transform_0(%arg0: i32) -> (i32, i32, i32) {
    %c0_i32 = arith.constant 0 : i32
    %c0_i32_0 = arith.constant 0 : i32
    %c0_i32_1 = arith.constant 0 : i32
    return %arg0, %c0_i32, %c0_i32_0 : i32, i32, i32
  }
  func.func @transform_1(%arg0: i32) -> (i32, i32) {
    %c0_i32 = arith.constant 0 : i32
    %c0_i32_0 = arith.constant 0 : i32
    %c0_i32_1 = arith.constant 0 : i32
    return %c0_i32, %c0_i32_0 : i32, i32
  }
  func.func @transform_2(%arg0: i32) -> (i32, i32) {
    %c0_i32 = arith.constant 0 : i32
    %c0_i32_0 = arith.constant 0 : i32
    %c0_i32_1 = arith.constant 0 : i32
    return %c0_i32, %c0_i32_0 : i32, i32
  }
  func.func @transform_3(%arg0: i32) -> (i32, i32, i32) {
    %c0_i32 = arith.constant 0 : i32
    %c0_i32_0 = arith.constant 0 : i32
    %c0_i32_1 = arith.constant 0 : i32
    %c0_i32_2 = arith.constant 0 : i32
    return %c0_i32, %c0_i32_0, %c0_i32_1 : i32, i32, i32
  }
  func.func @transform_4(%arg0: i32) -> (i32, i32) {
    %c0_i32 = arith.constant 0 : i32
    %c0_i32_0 = arith.constant 0 : i32
    %c0_i32_1 = arith.constant 0 : i32
    return %c0_i32, %c0_i32_0 : i32, i32
  }
  func.func @transform_5(%arg0: i32) -> (i32, i32) {
    %c0_i32 = arith.constant 0 : i32
    %c0_i32_0 = arith.constant 0 : i32
    %c0_i32_1 = arith.constant 0 : i32
    return %c0_i32, %c0_i32_0 : i32, i32
  }
  func.func @transform_6(%arg0: i32) -> (i32, i32) {
    %c0_i32 = arith.constant 0 : i32
    %c0_i32_0 = arith.constant 0 : i32
    %c0_i32_1 = arith.constant 0 : i32
    return %c0_i32, %c0_i32_0 : i32, i32
  }
  func.func @transform_7(%arg0: i32) -> (i32, i32, i32) {
    %c0_i32 = arith.constant 0 : i32
    %c0_i32_0 = arith.constant 0 : i32
    %c0_i32_1 = arith.constant 0 : i32
    return %arg0, %c0_i32, %c0_i32_0 : i32, i32, i32
  }
}

</mosaic_0001>

<bundles_post_ra>
// kernel: tpu_custom_call.1
= control target key start
LH: loop header
LB: loop body
LE: loop exit
PB: predicated region body
PF: predicated region fallthrough
CT: control target
= control target key end

     0   :  { %12 = vsyncpa [#allocation4], 0  ;;  %s1543_s0 = inlined_call_operand.vmem [shape: f32[2,16,64], index: 0, kind: input, shape index: {}]   ;;  %s1544_s1 = inlined_call_operand.vmem [shape: f32[64,128], index: 1, kind: input, shape index: {}]   ;;  %s1545_s2 = inlined_call_operand.vmem [shape: f32[1,128], index: 2, kind: input, shape index: {}]   ;;  %s1546_s3 = inlined_call_operand.vmem [shape: f32[3,3,128], index: 3, kind: input, shape index: {}]   ;;  %s1547_s4 = inlined_call_operand.vmem [shape: f32[1,128], index: 4, kind: input, shape index: {}]   ;;  %s1548_s5 = inlined_call_operand.vmem [shape: f32[128,64], index: 5, kind: input, shape index: {}]   ;;  %s1549_s6 = inlined_call_operand.vmem [shape: f32[1,64], index: 6, kind: input, shape index: {}]   ;;  %s1550_s7 = inlined_call_operand.hbm [shape: f32[2,16,64], index: 7, kind: output, shape index: {}]  }
   0x1   :  { %14 = vsyncpa [#allocation4 + $0x1], 0  ;;  %s1192_s24 = smov 0   ;;  %s1194_s25 = smov 0  }
   0x2   :  { %s1196_s26 = smov 0   ;;  %s1198_s27 = smov 0  }
   0x3 LB: > { %s1213_s28 = sadd.s32 4294967295, %s1143_s27   ;;  %s925_s29 = sadd.s32 4294967294, %s1143_s27   ;;  %s1143_s27 = sphi %s1198_s27, %s1556_s27   ;;  %s1139_s26 = sphi %s1196_s26, %s1555_s26   ;;  %s1135_s25 = sphi %s1194_s25, %s1554_s25   ;;  %s1131_s24 = sphi %s1192_s24, %s1553_s24  }
   0x4   : > { %s1217_s30 = sadd.s32 1, %s1143_s27   ;;  %s179_s8 = sadd.s32 1, %s1139_s26 }
   0x5   : > { %s176_s9 = ssub.s32 %s1143_s27, %s1217_s30  ;;  %p189_p0 = scmp.ne.s32.totalorder %s1139_s26, %s1135_s25 }
   0x6   : > { %p177_p1 = scmp.eq.s32.totalorder %s176_s9, 0  ;;  %p190_p2 = scmp.eq.s32.totalorder %s1213_s28, 1 }
   0x7   : > { %p195_p3 = scmp.ne.s32.totalorder %s1135_s25, %s1131_s24  ;;  %p196_p4 = scmp.eq.s32.totalorder %s925_s29, 1 }
   0x8   : > { %s1228_s10 = scalar_select %p177_p1, %s1139_s26, %s179_s8  }
   0x9   : > { %p1230_p5 = por %p190_p2, %p189_p0  ;;  %p1234_p6 = por %p196_p4, %p195_p3 }
   0xa   : > { %p928_p7 = scmp.ge.s32.totalorder %s1143_s27, 1  ;;  %p240_p8 = scmp.lt.s32.totalorder %s1143_s27, 3 }
   0xc   : > { %p241_p9 = pnand %p928_p7, %p240_p8 }
   0xd   : > { %p272_p10 = scmp.lt.s32.totalorder (!%p241_p9), %s1213_s28, 1  ;;  %s1146_s14 = smov (!%p241_p9), 8  }
   0xe   : > { %244 = sbr.rel (%p241_p9) target bundleno = 780 (0x30c), region = 48  ;;  %s1147_s15 = smov (!%p241_p9), 16  }
   0xf   : > { %s1148_s16 = smov (!%p241_p9), 120   ;;  %s1149_s17 = smov (!%p241_p9), 112  }
  0x10   : > { %s269_s9 = sand.u32 (!%p241_p9), 1, %s1135_s25   ;;  %s947_s20 = sshll.u32 (!%p241_p9), %s1213_s28, 8 }
  0x11   : > { %s929_s13 = sshll.u32 (!%p241_p9), %s269_s9, 4  ;;  %s1499_s23 = scalar_lea.hbm (!%p241_p9), %s1550_s7, %s947_s20 }
  0x12   : > { %s271_s18 = scalar_lea.vmem (!%p241_p9), [#allocation3], %s929_s13 }
  0x13   : > { %v286_v0 = vld [vmem:[%s1544_s1 + $0x38] sm:$0xff]  ;;  %v285_v1 = vld [vmem:[%s1544_s1 + $0x30] sm:$0xff]  ;;  %v284_v2 = vld [vmem:[%s1544_s1 + $0x28] sm:$0xff]  ;;  %s273_s19 = scalar_select %p272_p10, %s1213_s28, 1  ;;  %vm294_vm0 = vcmask 523264   ;;  %v388_v10 = vlaneseq  ;;  %v1145_v13 = vmov 0.0  }
  0x14   : > { %976 = vmatprep.subr.mxu0 %v286_v0  ;;  %v283_v3 = vld [vmem:[%s1544_s1 + $0x20] sm:$0xff]  ;;  %v282_v4 = vld [vmem:[%s1544_s1 + $0x18] sm:$0xff]  ;;  %v281_v6 = vld [vmem:[%s1544_s1 + $0x10] sm:$0xff]  ;;  %vm401_vm2 = vcmask 57344   ;;  %vm407_vm3 = vcmask 122944   ;;  %vm397_vm4 = vcmask 64513  }
  0x15   : > { %977 = vmatpush3.msra.mxu0 %v286_v0  ;;  %s946_s22 = sshll.u32 %s273_s19, 4  ;;  %v280_v7 = vld [vmem:[%s1544_s1 + $0x8] sm:$0xff]  ;;  %v279_v8 = vld [vmem:[%s1544_s1] sm:$0xff]  ;;  %v443_v11 = vshrl.u32 %v388_v10, 7  ;;  %vm390_vm1 = vcmp.lt.s32.totalorder %v388_v10, 144  ;;  %vm403_vm5 = vcmask 130113  }
  0x16   : > { %978 = vmatprep.subr.mxu0 %v285_v1  ;;  %s276_s8 = scalar_lea.vmem %s1543_s0, %s946_s22  ;;  %392 = vst.msk [vmem:[#allocation2] ss:$8 sm:$0x3] %vm390_vm1, %v1145_v13  ;;  %395 = vst.msk [vmem:[#allocation2 + $0x21] ss:$8 sm:$0x3] %vm390_vm1, %v1145_v13 }
  0x17   : > { %979 = vmatpush3.msra.mxu0 %v285_v1  ;;  %v1260_v5 = vld [vmem:[%s276_s8] sm:$0xff]  ;;  %v1273_v9 = vld [vmem:[%s276_s8 + $0x8] sm:$0xff]  ;;  %v444_v12 = vsub.s32 0, %v443_v11  ;;  %402 = vst.msk [vmem:[#allocation2 + $0x20] sm:$0x1] %vm401_vm2, %v1145_v13  ;;  %vm399_vm6 = vcmask 64512  }
  0x18   : > { %980 = vmatprep.subr.mxu0 %v284_v2  ;;  %992 = vmatprep.mubr.msk.f32.mxu0 %vm294_vm0, %v1260_v5  ;;  %v440_v14 = vld [vmem:[%s1546_s3 + $0x4] sm:$0x7]  ;;  %v441_v16 = vld [vmem:[%s1546_s3 + $0x8] sm:$0x7]  ;;  %v439_v18 = vld [vmem:[%s1546_s3] sm:$0x7] }
  0x19   : > { %981 = vmatpush3.msra.mxu0 %v284_v2  ;;  %v1280_v15 = vrot.slane %v440_v14, %v444_v12  ;;  %v1285_v17 = vrot.slane %v441_v16, %v444_v12  ;;  %v1290_v19 = vrot.slane %v439_v18, %v444_v12  ;;  %408 = vst.msk [vmem:[#allocation2 + $0x28] sm:$0x1] %vm407_vm3, %v1145_v13  ;;  %v932_v20 = vld [vmem:[%s1545_s2] ss:$0 sm:$0xff]  ;;  %vm405_vm7 = vcmask 130112   ;;  %s863_s19 = sshll.u32 %s271_s18, 4  ;;  %s1492_s19 = int_to_ptr.vmem [resolvable:$true] %s863_s19 }
  0x1a   : > { %982 = vmatprep.subr.mxu0 %v283_v3  ;;  %398 = vst.msk [vmem:[#allocation2] sm:$0xfe] %vm397_vm4, %v1145_v13  ;;  %v490_v32 = vsub.s32 1, %v443_v11  ;;  %vm411_vm10 = vcmask 1040384   ;;  %v609_v40 = vsub.s32 2, %v443_v11  ;;  %vm430_vm11 = vcmask 1040448  }
  0x1b   : > { %983 = vmatpush3.msra.mxu0 %v283_v3  ;;  %404 = vst.msk [vmem:[#allocation2 + $0x8] sm:$0xfe] %vm403_vm5, %v1145_v13  ;;  %vm424_vm12 = vcmask 1047617   ;;  %vm427_vm13 = vcmask 1047616   ;;  %vm458_vm14 = vcmask 1046528   ;;  %vm478_vm15 = vcmask 1045504  }
  0x1c   : > { %984 = vmatprep.subr.mxu0 %v282_v4  ;;  %400 = vst.msk [vmem:[#allocation2 + $0x10] sm:$0xff] %vm399_vm6, %v1145_v13  ;;  %v522_v38 = vrot.slane %v440_v14, %v490_v32  ;;  %v566_v39 = vrot.slane %v441_v16, %v490_v32  ;;  %v491_v42 = vrot.slane %v439_v18, %v490_v32  ;;  %vm512_vm1 = vcmask 982016   ;;  %s1502_s28 = scalar_lea.sflag [#allocation4], %s269_s9  ;;  %s1083_s29 = scalar_lea.vmem %s1492_s19, 256 }
  0x1d   : > { %985 = vmatpush3.msra.mxu0 %v282_v4  ;;  %406 = vst.msk [vmem:[#allocation2 + $0x18] sm:$0xff] %vm405_vm7, %v1145_v13  ;;  %v610_v43 = vrot.slane %v439_v18, %v609_v40  ;;  %v641_v44 = vrot.slane %v440_v14, %v609_v40  ;;  %v685_v45 = vrot.slane %v441_v16, %v609_v40  ;;  %p1084_p11 = scmp.ne.s32.totalorder %s1492_s19, %s1083_s29 }
  0x1e   : > { %986 = vmatprep.subr.mxu0 %v281_v6 }
  0x1f   : > { %987 = vmatpush3.msra.mxu0 %v281_v6  ;;  %p1085_p12 = pnand %p1084_p11, %p1230_p5 }
  0x20   : > { %988 = vmatprep.subr.mxu0 %v280_v7 }
  0x21   : > { %989 = vmatpush3.msra.mxu0 %v280_v7  ;;  %p1086_p13 = pneg %p1085_p12 }
  0x22   : > { %990 = vmatprep.subr.mxu0 %v279_v8 }
  0x23   : > { %991 = vmatpush3.msra.mxu0 %v279_v8 }
  0x24   : > { %993 = vmatmul.mubr.msk.f32.vlgmr.msra.gmra.mxu0 %vm294_vm0, %v1273_v9 }
  0xe4   : > { %v994_v21 = vpop.f32.mrf.mxu0 }
  0xe5   : > { %v373_v22 = vadd.f32 %v994_v21, %v932_v20 }
  0xe6   : > { %v367_v23 = vpop.f32.mrf.mxu0 }
  0xe7   : > { %v379_v24 = vmin.f32 %v373_v22, 0.0  ;;  %v368_v25 = vadd.f32 %v932_v20, %v367_v23  ;;  %vm377_vm8 = vcmp.gt.f32.partialorder %v373_v22, 0.0 }
  0xe9   : > { %v382_v26 = vmul.f32 1.442695, %v379_v24  ;;  %v378_v27 = vmin.f32 %v368_v25, 0.0  ;;  %vm376_vm9 = vcmp.gt.f32.partialorder %v368_v25, 0.0 }
  0xeb   : > { %1075 = vpow2.f32 %v382_v26  ;;  %v380_v28 = vmul.f32 1.442695, %v378_v27 }
  0xed   : > { %1077 = vpow2.f32 %v380_v28 }
  0xf8   : > { %v1076_v29 = vpop.eup %1075 }
  0xf9   : > { %v936_v30 = vadd.f32 -1.0, %v1076_v29 }
  0xfa   : > { %v1078_v31 = vpop.eup %1077 }
  0xfb   : > { %v387_v33 = vsel %vm377_vm8, %v373_v22, %v936_v30  ;;  %v935_v34 = vadd.f32 -1.0, %v1078_v31 }
  0xfc   : > { %v413_v35 = vrot.slane %v387_v33, 7 }
  0xfd   : > { %v386_v36 = vsel %vm376_vm9, %v368_v25, %v935_v34 }
  0xfe   : > { %419 = vrot.lane.b32.xlu1 %v413_v35, %s1146_s14  ;;  %v412_v37 = vrot.slane %v386_v36, 7 }
 0x100   : > { %415 = vrot.lane.b32.xlu0 %v412_v37, %s1146_s14  ;;  %v414_v41 = vsel %vm411_vm10, %v412_v37, %v413_v35 }
 0x102   : > { %524 = vrot.lane.b32.xlu1 %v522_v38, %s1146_s14 }
 0x104   : > { %417 = vrot.lane.b32.xlu0 %v414_v41, %s1146_s14 }
 0x106   : > { %568 = vrot.lane.b32.xlu1 %v566_v39, %s1146_s14 }
 0x108   : > { %493 = vrot.lane.b32.xlu0 %v491_v42, %s1146_s14 }
 0x10a   : > { %612 = vrot.lane.b32.xlu1 %v610_v43, %s1147_s15 }
 0x10c   : > { %643 = vrot.lane.b32.xlu0 %v641_v44, %s1147_s15 }
 0x110   : > { %687 = vrot.lane.b32.xlu0 %v685_v45, %s1147_s15 }
 0x170   : > { %v420_v46 = vpop.permute.xlu1 %419 }
 0x171   : > { %431 = vst.msk [vmem:[#allocation2 + $0x20] sm:$0x1] %vm430_vm11, %v420_v46 }
 0x172   : > { %432 = vst.msk [vmem:[#allocation2 + $0x28] sm:$0x1] %vm401_vm2, %v420_v46  ;;  %v416_v47 = vpop.permute.xlu0 %415  ;;  %vm631_vm2 = vcmask 916480  }
 0x173   : > { %425 = vst.msk [vmem:[#allocation2] sm:$0xfe] %vm424_vm12, %v416_v47 }
 0x174   : > { %426 = vst.msk [vmem:[#allocation2 + $0x8] sm:$0xfe] %vm397_vm4, %v416_v47  ;;  %v525_v48 = vpop.permute.xlu1 %524 }
 0x176   : > { %v418_v49 = vpop.permute.xlu0 %417 }
 0x177   : > { %428 = vst.msk [vmem:[#allocation2 + $0x10] sm:$0xff] %vm427_vm13, %v418_v49 }
 0x178   : > { %429 = vst.msk [vmem:[#allocation2 + $0x18] sm:$0xff] %vm399_vm6, %v418_v49  ;;  %v569_v50 = vpop.permute.xlu1 %568  ;;  %v1307_v51 = vld [vmem:[#allocation2 + $0x20] sm:$0x3] }
 0x179   : > { %v1315_v55 = vmul.f32 %v1280_v15, %v1307_v51  ;;  %v1319_v56 = vmul.f32 %v1285_v17, %v1307_v51  ;;  %v1335_v2 = vld [vmem:[#allocation2 + $0x28] sm:$0x3]  ;;  %v531_v14 = vmul.f32 %v525_v48, %v1307_v51  ;;  %v575_v18 = vmul.f32 %v569_v50, %v1307_v51 }
 0x17a   : > { %v494_v52 = vpop.permute.xlu0 %493  ;;  %v1311_v54 = vld [vmem:[#allocation2] sm:$0xff]  ;;  %v532_v8 = vmul.f32 %v525_v48, %v1335_v2  ;;  %v576_v16 = vmul.f32 %v569_v50, %v1335_v2 }
 0x17b   : > { %v1309_v53 = vld [vmem:[#allocation2 + $0x8] sm:$0xff]  ;;  %v496_v58 = vmul.f32 %v494_v52, %v1311_v54  ;;  %v527_v7 = vmul.f32 %v525_v48, %v1311_v54  ;;  %v446_v26 = vmul.f32 %v1290_v19, %v1311_v54  ;;  %v452_v27 = vmul.f32 %v1280_v15, %v1311_v54 }
 0x17c   : > { %v497_v57 = vmul.f32 %v494_v52, %v1309_v53  ;;  %v613_v59 = vpop.permute.xlu1 %612  ;;  %v528_v6 = vmul.f32 %v525_v48, %v1309_v53  ;;  %v547_v22 = vrot.slane %v532_v8, 1  ;;  %v572_v24 = vmul.f32 %v569_v50, %v1309_v53 }
 0x17d   : > { %504 = vrot.lane.b32.xlu1 %v496_v58, %s1148_s16  ;;  %v616_v60 = vmul.f32 %v613_v59, %v1309_v53  ;;  %v615_v61 = vmul.f32 %v613_v59, %v1311_v54  ;;  %v539_v21 = vrot.slane %v527_v7, 1  ;;  %v472_v31 = vmul.f32 %v1285_v17, %v1311_v54 }
 0x17e   : > { %506 = vrot.lane.b32.xlu0 %v497_v57, %s1148_s16  ;;  %v1329_v63 = vld [vmem:[#allocation2 + $0x10] sm:$0xff]  ;;  %v542_v20 = vrot.slane %v528_v6, 1  ;;  %v545_v32 = vrot.slane %v531_v14, 1  ;;  %v571_v33 = vmul.f32 %v569_v50, %v1311_v54  ;;  %v459_v37 = vrot.slane %v452_v27, 1  ;;  %v644_v39 = vpop.permute.xlu0 %643 }
 0x17f   : > { %v1327_v62 = vld [vmem:[#allocation2 + $0x18] sm:$0xff]  ;;  %v498_v1 = vmul.f32 %v494_v52, %v1329_v63  ;;  %v529_v4 = vmul.f32 %v525_v48, %v1329_v63  ;;  %v617_v11 = vmul.f32 %v613_v59, %v1329_v63  ;;  %v573_v25 = vmul.f32 %v569_v50, %v1329_v63 }
 0x180   : > { %v499_v0 = vmul.f32 %v494_v52, %v1327_v62  ;;  %v530_v3 = vmul.f32 %v525_v48, %v1327_v62  ;;  %v618_v10 = vmul.f32 %v613_v59, %v1327_v62  ;;  %v574_v23 = vmul.f32 %v569_v50, %v1327_v62 }
 0x181   : > { %623 = vrot.lane.b32.xlu1 %v615_v61, %s1149_s17  ;;  %v540_v13 = vrot.slane %v529_v4, 1  ;;  %v453_v30 = vmul.f32 %v1280_v15, %v1329_v63  ;;  %v473_v34 = vmul.f32 %v1285_v17, %v1329_v63  ;;  %v447_v35 = vmul.f32 %v1290_v19, %v1329_v63 }
 0x182   : > { %625 = vrot.lane.b32.xlu0 %v616_v60, %s1149_s17  ;;  %v543_v12 = vrot.slane %v530_v3, 1  ;;  %v587_v36 = vrot.slane %v574_v23, 2  ;;  %v462_v15 = vrot.slane %v1315_v55, 1  ;;  %v584_v41 = vrot.slane %v573_v25, 2  ;;  %v762_v3 = vld [vmem:[%s1548_s5 + $0x78] sm:$0xff] }
 0x183   : > { %v541_v29 = vsel %vm458_vm14, %v539_v21, %v540_v13  ;;  %v460_v38 = vrot.slane %v453_v30, 1  ;;  %v479_v42 = vrot.slane %v472_v31, 2  ;;  %v480_v43 = vrot.slane %v473_v34, 2  ;;  %995 = vmatprep.subr.mxu1 %v762_v3 }
 0x184   : > { %v544_v28 = vsel %vm458_vm14, %v542_v20, %v543_v12  ;;  %v548_v40 = vsel %vm458_vm14, %v543_v12, %v547_v22  ;;  %v546_v44 = vsel %vm458_vm14, %v540_v13, %v545_v32  ;;  %v482_v46 = vrot.slane %v1319_v56, 2  ;;  %996 = vmatpush3.msra.mxu1 %v762_v3  ;;  %v760_v20 = vld [vmem:[%s1548_s5 + $0x68] sm:$0xff] }
 0x185   : > { %508 = vrot.lane.b32.xlu1 %v498_v1, %s1148_s16  ;;  %v461_v45 = vsel %vm458_vm14, %v459_v37, %v460_v38  ;;  %v463_v17 = vsel %vm458_vm14, %v460_v38, %v462_v15  ;;  %v481_v47 = vsel %vm478_vm15, %v479_v42, %v480_v43  ;;  %v586_v49 = vrot.slane %v572_v24, 2  ;;  %v758_v37 = vld [vmem:[%s1548_s5 + $0x58] sm:$0xff]  ;;  %v753_v42 = vld [vmem:[%s1548_s5 + $0x30] sm:$0xff] }
 0x186   : > { %510 = vrot.lane.b32.xlu0 %v499_v0, %s1148_s16  ;;  %v466_v19 = vadd.f32 %v461_v45, %v446_v26  ;;  %v467_v48 = vadd.f32 %v463_v17, %v447_v35  ;;  %v583_v50 = vrot.slane %v571_v33, 2  ;;  %v647_v52 = vmul.f32 %v644_v39, %v1309_v53  ;;  %v750_v45 = vld [vmem:[%s1548_s5 + $0x18] sm:$0xff]  ;;  %v749_v17 = vld [vmem:[%s1548_s5 + $0x10] sm:$0xff] }
 0x187   : > { %v483_v55 = vsel %vm478_vm15, %v480_v43, %v482_v46  ;;  %v649_v57 = vmul.f32 %v644_v39, %v1327_v62  ;;  %v646_v58 = vmul.f32 %v644_v39, %v1311_v54  ;;  %v588_v60 = vsel %vm478_vm15, %v586_v49, %v587_v36  ;;  %v752_v43 = vld [vmem:[%s1548_s5 + $0x28] sm:$0xff] }
 0x188   : > { %v1384_v59 = vadd.f32 %v481_v47, %v466_v19  ;;  %v1386_v56 = vadd.f32 %v483_v55, %v467_v48  ;;  %v585_v61 = vsel %vm478_vm15, %v583_v50, %v584_v41  ;;  %v648_v0 = vmul.f32 %v644_v39, %v1329_v63  ;;  %v748_v46 = vld [vmem:[%s1548_s5 + $0x8] sm:$0xff]  ;;  %v747_v19 = vld [vmem:[%s1548_s5] sm:$0xff] }
 0x189   : > { %627 = vrot.lane.b32.xlu1 %v617_v11, %s1149_s17  ;;  %v591_v1 = vrot.slane %v576_v16, 2  ;;  %v589_v4 = vrot.slane %v575_v18, 2  ;;  %v661_v7 = vrot.slane %v647_v52, 1  ;;  %v662_v8 = vrot.slane %v649_v57, 1  ;;  %v688_v11 = vpop.permute.xlu0 %687  ;;  %v761_v18 = vld [vmem:[%s1548_s5 + $0x70] sm:$0xff] }
 0x18a   : > { %629 = vrot.lane.b32.xlu0 %v618_v10, %s1149_s17  ;;  %v658_v10 = vrot.slane %v646_v58, 1  ;;  %v659_v13 = vrot.slane %v648_v0, 1  ;;  %v651_v14 = vmul.f32 %v644_v39, %v1335_v2  ;;  %v650_v16 = vmul.f32 %v644_v39, %v1307_v51  ;;  %997 = vmatprep.subr.mxu1 %v761_v18  ;;  %v756_v39 = vld [vmem:[%s1548_s5 + $0x48] sm:$0xff] }
 0x18b   : > { %v592_v6 = vsel %vm478_vm15, %v587_v36, %v591_v1  ;;  %v590_v12 = vsel %vm478_vm15, %v584_v41, %v589_v4  ;;  %v663_v21 = vsel %vm458_vm14, %v661_v7, %v662_v8  ;;  %v691_v22 = vmul.f32 %v688_v11, %v1309_v53  ;;  %998 = vmatpush3.msra.mxu1 %v761_v18  ;;  %v754_v41 = vld [vmem:[%s1548_s5 + $0x38] sm:$0xff] }
 0x18c   : > { %v693_v23 = vmul.f32 %v688_v11, %v1327_v62  ;;  %v690_v24 = vmul.f32 %v688_v11, %v1311_v54  ;;  %v660_v25 = vsel %vm458_vm14, %v658_v10, %v659_v13  ;;  %v666_v26 = vrot.slane %v651_v14, 1  ;;  %999 = vmatprep.subr.mxu1 %v760_v20 }
 0x18d   : > { %549 = vrot.lane.b32.xlu1 %v541_v29, %s1148_s16  ;;  %v664_v27 = vrot.slane %v650_v16, 1  ;;  %1000 = vmatpush3.msra.mxu1 %v760_v20  ;;  %v705_v29 = vrot.slane %v691_v22, 2  ;;  %v695_v62 = vmul.f32 %v688_v11, %v1335_v2  ;;  %v694_v33 = vmul.f32 %v688_v11, %v1307_v51  ;;  %v757_v51 = vld [vmem:[%s1548_s5 + $0x50] sm:$0xff] }
 0x18e   : > { %551 = vrot.lane.b32.xlu0 %v544_v28, %s1148_s16  ;;  %v692_v28 = vmul.f32 %v688_v11, %v1329_v63  ;;  %v706_v30 = vrot.slane %v693_v23, 2  ;;  %v702_v53 = vrot.slane %v690_v24, 2  ;;  %v667_v54 = vsel %vm458_vm14, %v662_v8, %v666_v26  ;;  %v759_v63 = vld [vmem:[%s1548_s5 + $0x60] sm:$0xff] }
 0x18f   : > { %v665_v31 = vsel %vm458_vm14, %v659_v13, %v664_v27  ;;  %v710_v2 = vrot.slane %v695_v62, 2  ;;  %v708_v36 = vrot.slane %v694_v33, 2  ;;  %1001 = vmatprep.subr.mxu1 %v759_v63 }
 0x190   : > { %v703_v32 = vrot.slane %v692_v28, 2  ;;  %v707_v34 = vsel %vm478_vm15, %v705_v29, %v706_v30  ;;  %1002 = vmatpush3.msra.mxu1 %v759_v63 }
 0x191   : > { %553 = vrot.lane.b32.xlu1 %v546_v44, %s1148_s16  ;;  %1003 = vmatprep.subr.mxu1 %v758_v37  ;;  %v711_v38 = vsel %vm478_vm15, %v706_v30, %v710_v2  ;;  %v751_v44 = vld [vmem:[%s1548_s5 + $0x20] sm:$0xff] }
 0x192   : > { %555 = vrot.lane.b32.xlu0 %v548_v40, %s1148_s16  ;;  %v704_v35 = vsel %vm478_vm15, %v702_v53, %v703_v32  ;;  %v709_v15 = vsel %vm478_vm15, %v703_v32, %v708_v36  ;;  %1004 = vmatpush3.msra.mxu1 %v758_v37  ;;  %v755_v40 = vld [vmem:[%s1548_s5 + $0x40] sm:$0xff] }
 0x193   : > { %1005 = vmatprep.subr.mxu1 %v757_v51  ;;  %v937_v32 = vld [vmem:[%s1547_s4] ss:$0 sm:$0xff] }
 0x194   : > { %1006 = vmatpush3.msra.mxu1 %v757_v51 }
 0x195   : > { %593 = vrot.lane.b32.xlu1 %v585_v61, %s1148_s16  ;;  %1007 = vmatprep.subr.mxu1 %v756_v39 }
 0x196   : > { %595 = vrot.lane.b32.xlu0 %v588_v60, %s1148_s16  ;;  %1008 = vmatpush3.msra.mxu1 %v756_v39 }
 0x197   : > { %1009 = vmatprep.subr.mxu1 %v755_v40 }
 0x198   : > { %1010 = vmatpush3.msra.mxu1 %v755_v40 }
 0x199   : > { %597 = vrot.lane.b32.xlu1 %v590_v12, %s1148_s16  ;;  %1011 = vmatprep.subr.mxu1 %v754_v41 }
 0x19a   : > { %599 = vrot.lane.b32.xlu0 %v592_v6, %s1148_s16  ;;  %1012 = vmatpush3.msra.mxu1 %v754_v41 }
 0x19b   : > { %1013 = vmatprep.subr.mxu1 %v753_v42 }
 0x19c   : > { %1014 = vmatpush3.msra.mxu1 %v753_v42 }
 0x19d   : > { %668 = vrot.lane.b32.xlu1 %v660_v25, %s1149_s17  ;;  %1015 = vmatprep.subr.mxu1 %v752_v43 }
 0x19e   : > { %670 = vrot.lane.b32.xlu0 %v663_v21, %s1149_s17  ;;  %1016 = vmatpush3.msra.mxu1 %v752_v43 }
 0x19f   : > { %1017 = vmatprep.subr.mxu1 %v751_v44 }
 0x1a0   : > { %1018 = vmatpush3.msra.mxu1 %v751_v44 }
 0x1a1   : > { %672 = vrot.lane.b32.xlu1 %v665_v31, %s1149_s17  ;;  %1019 = vmatprep.subr.mxu1 %v750_v45 }
 0x1a2   : > { %674 = vrot.lane.b32.xlu0 %v667_v54, %s1149_s17  ;;  %1020 = vmatpush3.msra.mxu1 %v750_v45 }
 0x1a3   : > { %1021 = vmatprep.subr.mxu1 %v749_v17 }
 0x1a4   : > { %1022 = vmatpush3.msra.mxu1 %v749_v17 }
 0x1a5   : > { %712 = vrot.lane.b32.xlu1 %v704_v35, %s1149_s17  ;;  %1023 = vmatprep.subr.mxu1 %v748_v46 }
 0x1a6   : > { %714 = vrot.lane.b32.xlu0 %v707_v34, %s1149_s17  ;;  %1024 = vmatpush3.msra.mxu1 %v748_v46 }
 0x1a7   : > { %1025 = vmatprep.subr.mxu1 %v747_v19 }
 0x1a8   : > { %1026 = vmatpush3.msra.mxu1 %v747_v19  ;;  %v940_v19 = vld [vmem:[%s1549_s6] ss:$0 sm:$0xff] }
 0x1a9   : > { %716 = vrot.lane.b32.xlu1 %v709_v15, %s1149_s17 }
 0x1aa   : > { %718 = vrot.lane.b32.xlu0 %v711_v38, %s1149_s17  ;;  %s1150_s17 = smov [#allocation3]  }
 0x1ab   : > { %s1087_s8 = sshll.u32 %s1150_s17, 4  ;;  %s1088_s8 = int_to_ptr.vmem [resolvable:$false] %s1087_s8 }
 0x1ac   : > { %s1089_s13 = scalar_lea.vmem %s1088_s8, 512  ;;  %p1090_p0 = scmp.lt.s32.totalorder %s1492_s19, %s1088_s8 }
 0x1ad   : > { %p1091_p1 = scmp.lt.s32.totalorder %s1089_s13, %s1083_s29 }
 0x1af   : > { %p1092_p2 = por %p1091_p1, %p1090_p0 }
 0x1b1   : > { %p1093_p3 = pnand %p1092_p2, %p1086_p13 }
 0x1ef   : > { %v505_v47 = vpop.permute.xlu1 %504 }
 0x1f0   : > { %v507_v48 = vpop.permute.xlu0 %506 }
 0x1f1   : > { %v513_v6 = vsel %vm512_vm1, %v505_v47, %v507_v48 }
 0x1f2   : > { %v517_v11 = vadd.f32 %v513_v6, %v1384_v59 }
 0x1f3   : > { %v624_v49 = vpop.permute.xlu1 %623 }
 0x1f4   : > { %v626_v50 = vpop.permute.xlu0 %625 }
 0x1f5   : > { %v632_v59 = vsel %vm631_vm2, %v624_v49, %v626_v50 }
 0x1f7   : > { %v509_v52 = vpop.permute.xlu1 %508 }
 0x1f8   : > { %v511_v55 = vpop.permute.xlu0 %510 }
 0x1f9   : > { %v514_v12 = vsel %vm512_vm1, %v509_v52, %v511_v55 }
 0x1fa   : > { %v518_v21 = vadd.f32 %v514_v12, %v1386_v56 }
 0x1fb   : > { %v628_v57 = vpop.permute.xlu1 %627 }
 0x1fc   : > { %v630_v58 = vpop.permute.xlu0 %629 }
 0x1fd   : > { %v633_v54 = vsel %vm631_vm2, %v628_v57, %v630_v58 }
 0x1ff   : > { %v550_v60 = vpop.permute.xlu1 %549 }
 0x200   : > { %v552_v61 = vpop.permute.xlu0 %551 }
 0x201   : > { %v557_v10 = vsel %vm512_vm1, %v550_v60, %v552_v61 }
 0x202   : > { %v561_v14 = vadd.f32 %v557_v10, %v517_v11 }
 0x203   : > { %v554_v0 = vpop.permute.xlu1 %553 }
 0x204   : > { %v556_v1 = vpop.permute.xlu0 %555 }
 0x205   : > { %v558_v20 = vsel %vm512_vm1, %v554_v0, %v556_v1 }
 0x206   : > { %v562_v24 = vadd.f32 %v558_v20, %v518_v21 }
 0x207   : > { %v594_v3 = vpop.permute.xlu1 %593 }
 0x208   : > { %v596_v4 = vpop.permute.xlu0 %595 }
 0x209   : > { %v601_v13 = vsel %vm512_vm1, %v594_v3, %v596_v4 }
 0x20a   : > { %v605_v22 = vadd.f32 %v601_v13, %v561_v14 }
 0x20b   : > { %v598_v7 = vpop.permute.xlu1 %597 }
 0x20c   : > { %v600_v8 = vpop.permute.xlu0 %599  ;;  %v636_v29 = vadd.f32 %v632_v59, %v605_v22 }
 0x20d   : > { %v602_v23 = vsel %vm512_vm1, %v598_v7, %v600_v8 }
 0x20e   : > { %v606_v28 = vadd.f32 %v602_v23, %v562_v24 }
 0x20f   : > { %v669_v16 = vpop.permute.xlu1 %668 }
 0x210   : > { %v671_v18 = vpop.permute.xlu0 %670  ;;  %v637_v33 = vadd.f32 %v633_v54, %v606_v28 }
 0x211   : > { %v676_v27 = vsel %vm631_vm2, %v669_v16, %v671_v18 }
 0x212   : > { %v680_v30 = vadd.f32 %v676_v27, %v636_v29 }
 0x213   : > { %v673_v25 = vpop.permute.xlu1 %672 }
 0x214   : > { %v675_v26 = vpop.permute.xlu0 %674 }
 0x215   : > { %v677_v31 = vsel %vm631_vm2, %v673_v25, %v675_v26 }
 0x216   : > { %v681_v34 = vadd.f32 %v677_v31, %v637_v33 }
 0x217   : > { %v713_v53 = vpop.permute.xlu1 %712 }
 0x218   : > { %v715_v62 = vpop.permute.xlu0 %714 }
 0x219   : > { %v720_v56 = vsel %vm631_vm2, %v713_v53, %v715_v62 }
 0x21a   : > { %v724_v63 = vadd.f32 %v720_v56, %v680_v30 }
 0x21b   : > { %v717_v35 = vpop.permute.xlu1 %716 }
 0x21c   : > { %v719_v2 = vpop.permute.xlu0 %718  ;;  %v733_v36 = vadd.f32 %v937_v32, %v724_v63 }
 0x21d   : > { %v721_v37 = vsel %vm631_vm2, %v717_v35, %v719_v2 }
 0x21e   : > { %v725_v51 = vadd.f32 %v721_v37, %v681_v34  ;;  %v737_v38 = vmin.f32 %v733_v36, 0.0  ;;  %vm735_vm3 = vcmp.gt.f32.partialorder %v733_v36, 0.0 }
 0x220   : > { %v734_v15 = vadd.f32 %v937_v32, %v725_v51  ;;  %v739_v39 = vmul.f32 1.442695, %v737_v38 }
 0x222   : > { %v738_v40 = vmin.f32 %v734_v15, 0.0  ;;  %1079 = vpow2.f32 %v739_v39  ;;  %vm736_vm4 = vcmp.gt.f32.partialorder %v734_v15, 0.0 }
 0x224   : > { %v741_v41 = vmul.f32 1.442695, %v738_v40 }
 0x226   : > { %1081 = vpow2.f32 %v741_v41 }
 0x22f   : > { %v1080_v42 = vpop.eup %1079 }
 0x230   : > { %v938_v43 = vadd.f32 -1.0, %v1080_v42 }
 0x232   : > { %v745_v44 = vsel %vm735_vm3, %v733_v36, %v938_v43 }
 0x233   : > { %v1082_v45 = vpop.eup %1081  ;;  %1027 = vmatprep.mubr.f32.mxu1 %v745_v44 }
 0x234   : > { %v939_v17 = vadd.f32 -1.0, %v1082_v45 }
 0x236   : > { %v746_v46 = vsel %vm736_vm4, %v734_v15, %v939_v17 }
 0x237   : > { %1028 = vmatmul.mubr.f32.vlgmr.msra.gmra.mxu1 %v746_v46 }
 0x2f7   : > { %v1029_v47 = vpop.f32.mrf.mxu1 }
 0x2f8   : > { %v842_v48 = vadd.f32 %v1029_v47, %v940_v19 }
 0x2f9   : > { %v836_v49 = vpop.f32.mrf.mxu1 }
 0x2fa   : > { %v846_v50 = vadd.f32 %v842_v48, %v1273_v9  ;;  %v837_v52 = vadd.f32 %v940_v19, %v836_v49 }
 0x2fc   : > { %848 = vst.msk [vmem:[%s271_s18 + $0x8] sm:$0xff] %vm294_vm0, %v846_v50  ;;  %v845_v55 = vadd.f32 %v837_v52, %v1260_v5 }
 0x2fe   : > { %847 = vst.msk [vmem:[%s271_s18] sm:$0xff] %vm294_vm0, %v845_v55 }
 0x2ff   : > { %1096 = shalt.err (!%p1093_p3)
}
 0x300   : > { %s1097_s9 = scalar_lea.hbm %s1499_s23, 256  ;;  %s1101_s18 = scalar_lea.hbm %s1550_s7, 512 }
 0x301   : > { %p1098_p4 = scmp.ne.s32.totalorder %s1499_s23, %s1097_s9  ;;  %p1102_p9 = scmp.lt.s32.totalorder %s1499_s23, %s1550_s7 }
 0x302   : > { %p1103_p10 = scmp.lt.s32.totalorder %s1101_s18, %s1097_s9 }
 0x303   : > { %p1099_p7 = pnand %p1098_p4, %p1230_p5 }
 0x304   : > { %p1104_p11 = por %p1103_p10, %p1102_p9 }
 0x305   : > { %p1100_p8 = pneg %p1099_p7 }
 0x307   : > { %p1105_p12 = pnand %p1104_p11, %p1100_p8 }
 0x309   : > { %1108 = shalt.err (!%p1105_p12)
}
 0x30a   : > { %s1151_s22 = smov 128  }
 0x30b   : > { %1030 = dma.vmem_to_hbm [thread:$0]  (%p1230_p5), %s1492_s19, 256, %s1499_s23, %s1502_s28, %s1151_s22, %s1151_s22, %s1146_s14  }
 0x30c PF: > { %p1036_p13 = scmp.ge.s32.totalorder %s1143_s27, 2  ;;  %s878_s29 = sand.u32 1, %s1131_s24  }
 0x30d   : > { %s879_s17 = scalar_lea.sflag [#allocation4], %s878_s29 }
 0x30e   : > { %p1033_p0 = pnand %p1036_p13, %p1234_p6 }
 0x310   : > { %p1034_p1 = pneg %p1033_p0 }
 0x312   : > { %1126 = dma.done.wait (%p1034_p1), %s879_s17, 256  }
 0x313   : > { %1128 = vsyncadd (%p1034_p1), %s879_s17, 4294967040  ;;  %p17_p2 = scmp.ge.s32.totalorder %s1217_s30, 4   ;;  %s1553_s24 = smov %s1135_s25 }
 0x314   : > { %s1554_s25 = smov %s1139_s26  ;;  %s1555_s26 = smov %s1228_s10 }
 0x315   : > { %s1556_s27 = smov %s1217_s30  ;;  %19 = sbr.rel (!%p17_p2) target bundleno = 3 (0x3), region = 84 }
 0x31a   :  { %884 = vsyncpa [#allocation4], 1 }
 0x31b   :  { %886 = vsyncpa [#allocation4 + $0x1], 1 }

</bundles_post_ra>
